<compile_context>
chip_gen: v6e
topology: v6e:2x2x1
jax: 0.10.0
libtpu: 0.0.40
codegen_flags: <defaults>
</compile_context>

<pallas_src>
import functools
import math

import jax
import jax.numpy as jnp
from jax.experimental import pallas as pl
from jax.experimental.pallas import tpu as pltpu


_SMALL_ROW_BYTES = 16 * 1024      # below this, per-row HBM->HBM DMAs are descriptor-bound
_VMEM_STAGING_BUDGET = 40 << 20   # staging cap, leaves headroom on v7x's 64 MiB VMEM
_VMEM_LIMIT_BYTES = 48 << 20      # explicit scoped-VMEM limit for the staged path


def _coalesce_runs(idx):
    """Group a static index list into contiguous runs: (dst_start, src_start, length)."""
    runs = []
    start = 0
    n = len(idx)
    while start < n:
        end = start + 1
        while end < n and idx[end] == idx[end - 1] + 1:
            end += 1
        runs.append((start, idx[start], end - start))
        start = end
    return tuple(runs)


def _make_run_copy_kernel(runs):
    """HBM->HBM gather: one direct DMA per contiguous index run, one aggregate wait."""

    def kernel(x_hbm, o_hbm, sem):
        # Indices are compile-time constants: every DMA uses immediate offsets
        # (no SMEM idx, no scalar loads).  All copies share one byte-counting
        # semaphore and are issued back-to-back for maximal DMA-engine overlap.
        for dst, src, length in runs:
            pltpu.make_async_copy(
                x_hbm.at[pl.ds(src, length)],
                o_hbm.at[pl.ds(dst, length)],
                sem,
            ).start()
        # Aggregate drain: the runs cover every output row exactly once, so a
        # single full-output descriptor retires all outstanding copies (O(1)).
        pltpu.make_async_copy(o_hbm, o_hbm, sem).wait()

    return kernel


def _make_vmem_gather_kernel(idx, lo, span):
    """Small-row gather: bulk-copy the [lo, lo+span) slab into VMEM, permute, bulk-copy out."""

    def kernel(x_hbm, o_hbm, xbuf, obuf, sem):
        cp_in = pltpu.make_async_copy(x_hbm.at[pl.ds(lo, span)], xbuf, sem)
        cp_in.start()
        cp_in.wait()
        for out_i, src_i in enumerate(idx):       # static indices -> plain vector moves
            obuf[out_i] = xbuf[src_i - lo]
        cp_out = pltpu.make_async_copy(obuf, o_hbm, sem)
        cp_out.start()
        cp_out.wait()

    return kernel


@functools.lru_cache(maxsize=None)
def _build_gather(idx, shape, dtype_name):
    """Build (and cache) a jitted axis-0 gather for a static (idx, shape, dtype)."""
    dtype = jnp.dtype(dtype_name)
    trailing = shape[1:]
    n_out = len(idx)
    row_bytes = int(math.prod(trailing)) * dtype.itemsize
    out_shape = jax.ShapeDtypeStruct((n_out,) + trailing, dtype)

    runs = _coalesce_runs(idx)
    lo = min(idx)
    span = max(idx) - lo + 1
    staging_bytes = (span + n_out) * row_bytes

    use_vmem_staging = (
        len(runs) > 1                      # a single run is already one big DMA
        and row_bytes <= _SMALL_ROW_BYTES  # tiny rows -> descriptor overhead dominates
        and staging_bytes <= _VMEM_STAGING_BUDGET
    )

    if use_vmem_staging:
        call = pl.pallas_call(
            _make_vmem_gather_kernel(idx, lo, span),
            out_shape=out_shape,
            in_specs=[pl.BlockSpec(memory_space=pl.ANY)],   # x stays in HBM
            out_specs=pl.BlockSpec(memory_space=pl.ANY),    # written via DMA only
            scratch_shapes=[
                pltpu.VMEM((span,) + trailing, dtype),
                pltpu.VMEM((n_out,) + trailing, dtype),
                pltpu.SemaphoreType.DMA(()),
            ],
            compiler_params=pltpu.CompilerParams(vmem_limit_bytes=_VMEM_LIMIT_BYTES),
        )
    else:
        call = pl.pallas_call(
            _make_run_copy_kernel(runs),
            out_shape=out_shape,
            in_specs=[pl.BlockSpec(memory_space=pl.ANY)],   # x stays in HBM
            out_specs=pl.BlockSpec(memory_space=pl.ANY),    # written via direct HBM->HBM DMA
            scratch_shapes=[pltpu.SemaphoreType.DMA(())],
        )
    return jax.jit(call)


def _gather_rows(x, idx):
    """Gather x[idx] along axis 0 for a static Python index list (already normalized)."""
    return _build_gather(tuple(idx), tuple(x.shape), str(x.dtype))(x)


def select(x, index=None, key=None):
    if index is None and key is None:
        raise ValueError
    if index is not None:
        if isinstance(index, tuple):
            # Faithful to PyTorch: x[(i, j, ...)] indexes successive axes.
            return x[index]
        if isinstance(index, int):
            # Fast path: a single-row select through a kernel is pure launch overhead.
            return x[index]
        # list / array-like of ints -> axis-0 gather via Pallas DMA kernels.
        idx = [int(i) for i in index]
        if not idx:
            return jnp.zeros((0,) + x.shape[1:], dtype=x.dtype)
        b = x.shape[0]
        norm = []
        for i in idx:
            j = i + b if i < 0 else i
            if not 0 <= j < b:
                # Match PyTorch: out-of-range indices raise instead of reading bad HBM.
                raise IndexError(f"index {i} is out of bounds for axis 0 with size {b}")
            norm.append(j)
        return _gather_rows(x, norm)
    # key-based selection: pure Python dict filtering, no tensor compute.
    # TODO(synk): dict filtering has no Pallas equivalent; handled in Python.
    keys = dict.fromkeys([key] if isinstance(key, str) else key)
    return {k: v for k, v in x.items() if k in keys}


class Select:
    """JAX/Pallas port of the liedet `Select` connector module."""

    def __init__(self, **kwargs):
        if "index" not in kwargs and "key" not in kwargs:
            raise ValueError
        self.kwargs = kwargs

    def __call__(self, x):
        return select(x, **self.kwargs)


if __name__ == "__main__":
    rng = jax.random.PRNGKey(0)
    B, C, H, W = 4, 4, 16, 16
    x = jax.random.normal(rng, (B, C, H, W), dtype=jnp.float32)

    # non-contiguous list, tiny rows -> VMEM-staged bulk gather (2 streaming DMAs)
    y = Select(index=[3, 0, 1])(x)
    jax.block_until_ready(y)
    assert y.shape == (3, C, H, W)
    assert jnp.array_equal(y, x[jnp.asarray([3, 0, 1])])

    # contiguous run -> coalesced into ONE direct HBM->HBM DMA
    y_run = Select(index=[1, 2, 3])(x)
    jax.block_until_ready(y_run)
    assert jnp.array_equal(y_run, x[jnp.asarray([1, 2, 3])])

    # negative indices are normalized (and bounds-checked) in Python before the kernel
    y_neg = Select(index=[-1, 0])(x)
    jax.block_until_ready(y_neg)
    assert jnp.array_equal(y_neg, x[jnp.asarray([B - 1, 0])])

    # larger rows (32 KiB) with multiple runs -> per-run HBM->HBM DMAs + one aggregate wait
    x_big = jax.random.normal(jax.random.PRNGKey(1), (4, 4, 64, 32), dtype=jnp.float32)
    y_big = Select(index=[3, 1])(x_big)
    jax.block_until_ready(y_big)
    assert jnp.array_equal(y_big, x_big[jnp.asarray([3, 1])])

    # int -> x[i] (fast path, no kernel launch for a single row)
    y_int = Select(index=2)(x)
    assert y_int.shape == (C, H, W)
    assert jnp.array_equal(y_int, x[2])

    # tuple -> multi-axis indexing, matching PyTorch x[(1, 2)] == x[1, 2]
    y_tup = Select(index=(1, 2))(x)
    assert y_tup.shape == (H, W)
    assert jnp.array_equal(y_tup, x[1, 2])

    # key-based dict filtering (pure Python; no kernel)
    d = {"a": x[0], "b": x[1], "c": x[2]}
    y_key = Select(key=("a", "c"))(d)
    assert set(y_key.keys()) == {"a", "c"}
    assert jnp.array_equal(y_key["a"], x[0]) and jnp.array_equal(y_key["c"], x[2])

    print("KERNEL_OK")
</pallas_src>

<mosaic_0001>
module attributes {stable_mosaic.version = 11 : i64} {
  func.func @kernel(%arg0: memref<4x4x16x16xf32, #tpu.memory_space<any>>, %arg1: memref<3x4x16x16xf32, #tpu.memory_space<any>>, %arg2: memref<4x4x16x16xf32, #tpu.memory_space<vmem>>, %arg3: memref<3x4x16x16xf32, #tpu.memory_space<vmem>>, %arg4: memref<!tpu.dma_semaphore, #tpu.memory_space<semaphore_mem>>) attributes {dimension_semantics = [], scalar_prefetch = 0 : i64, scratch_operands = 3 : i64, tpu.core_type = #tpu.core_type<tc>} {
    %c0_i32 = arith.constant 0 : i32
    %c0_i32_0 = arith.constant 0 : i32
    %c0_i32_1 = arith.constant 0 : i32
    %c0_i32_2 = arith.constant 0 : i32
    %0 = tpu.memref_slice %arg0[%c0_i32, %c0_i32_0, %c0_i32_1, %c0_i32_2] : memref<4x4x16x16xf32, #tpu.memory_space<any>> -> memref<4x4x16x16xf32, #tpu.memory_space<any>>
    tpu.enqueue_dma source(%0 : memref<4x4x16x16xf32, #tpu.memory_space<any>>) target(%arg2 : memref<4x4x16x16xf32, #tpu.memory_space<vmem>>) target_semaphore(%arg4 : memref<!tpu.dma_semaphore, #tpu.memory_space<semaphore_mem>>)
    %c0_i32_3 = arith.constant 0 : i32
    %c0_i32_4 = arith.constant 0 : i32
    %c0_i32_5 = arith.constant 0 : i32
    %c0_i32_6 = arith.constant 0 : i32
    %1 = tpu.memref_slice %arg0[%c0_i32_3, %c0_i32_4, %c0_i32_5, %c0_i32_6] : memref<4x4x16x16xf32, #tpu.memory_space<any>> -> memref<4x4x16x16xf32, #tpu.memory_space<any>>
    tpu.wait_dma2 semaphore(%arg4 : memref<!tpu.dma_semaphore, #tpu.memory_space<semaphore_mem>>) src(%1 : memref<4x4x16x16xf32, #tpu.memory_space<any>>) dst(%arg2 : memref<4x4x16x16xf32, #tpu.memory_space<vmem>>)
    %c3 = arith.constant 3 : index
    %c0 = arith.constant 0 : index
    %c0_7 = arith.constant 0 : index
    %c0_8 = arith.constant 0 : index
    %2 = vector.load %arg2[%c3, %c0, %c0_7, %c0_8] : memref<4x4x16x16xf32, #tpu.memory_space<vmem>>, vector<1x4x16x16xf32>
    %3 = vector.shape_cast %2 : vector<1x4x16x16xf32> to vector<4x16x16xf32>
    %c0_9 = arith.constant 0 : index
    %c0_10 = arith.constant 0 : index
    %c0_11 = arith.constant 0 : index
    %c0_12 = arith.constant 0 : index
    %4 = vector.load %arg3[%c0_9, %c0_10, %c0_11, %c0_12] : memref<3x4x16x16xf32, #tpu.memory_space<vmem>>, vector<1x4x16x16xf32>
    %5 = vector.shape_cast %4 : vector<1x4x16x16xf32> to vector<4x16x16xf32>
    %6 = vector.shape_cast %3 : vector<4x16x16xf32> to vector<1x4x16x16xf32>
    tpu.vector_store %arg3[%c0_9, %c0_10, %c0_11, %c0_12], %6 {strides = array<i32>} : memref<3x4x16x16xf32, #tpu.memory_space<vmem>>, vector<1x4x16x16xf32>,
    %c0_13 = arith.constant 0 : index
    %c0_14 = arith.constant 0 : index
    %c0_15 = arith.constant 0 : index
    %c0_16 = arith.constant 0 : index
    %7 = vector.load %arg2[%c0_13, %c0_14, %c0_15, %c0_16] : memref<4x4x16x16xf32, #tpu.memory_space<vmem>>, vector<1x4x16x16xf32>
    %8 = vector.shape_cast %7 : vector<1x4x16x16xf32> to vector<4x16x16xf32>
    %c1 = arith.constant 1 : index
    %c0_17 = arith.constant 0 : index
    %c0_18 = arith.constant 0 : index
    %c0_19 = arith.constant 0 : index
    %9 = vector.load %arg3[%c1, %c0_17, %c0_18, %c0_19] : memref<3x4x16x16xf32, #tpu.memory_space<vmem>>, vector<1x4x16x16xf32>
    %10 = vector.shape_cast %9 : vector<1x4x16x16xf32> to vector<4x16x16xf32>
    %11 = vector.shape_cast %8 : vector<4x16x16xf32> to vector<1x4x16x16xf32>
    tpu.vector_store %arg3[%c1, %c0_17, %c0_18, %c0_19], %11 {strides = array<i32>} : memref<3x4x16x16xf32, #tpu.memory_space<vmem>>, vector<1x4x16x16xf32>,
    %c1_20 = arith.constant 1 : index
    %c0_21 = arith.constant 0 : index
    %c0_22 = arith.constant 0 : index
    %c0_23 = arith.constant 0 : index
    %12 = vector.load %arg2[%c1_20, %c0_21, %c0_22, %c0_23] : memref<4x4x16x16xf32, #tpu.memory_space<vmem>>, vector<1x4x16x16xf32>
    %13 = vector.shape_cast %12 : vector<1x4x16x16xf32> to vector<4x16x16xf32>
    %c2 = arith.constant 2 : index
    %c0_24 = arith.constant 0 : index
    %c0_25 = arith.constant 0 : index
    %c0_26 = arith.constant 0 : index
    %14 = vector.load %arg3[%c2, %c0_24, %c0_25, %c0_26] : memref<3x4x16x16xf32, #tpu.memory_space<vmem>>, vector<1x4x16x16xf32>
    %15 = vector.shape_cast %14 : vector<1x4x16x16xf32> to vector<4x16x16xf32>
    %16 = vector.shape_cast %13 : vector<4x16x16xf32> to vector<1x4x16x16xf32>
    tpu.vector_store %arg3[%c2, %c0_24, %c0_25, %c0_26], %16 {strides = array<i32>} : memref<3x4x16x16xf32, #tpu.memory_space<vmem>>, vector<1x4x16x16xf32>,
    tpu.enqueue_dma source(%arg3 : memref<3x4x16x16xf32, #tpu.memory_space<vmem>>) target(%arg1 : memref<3x4x16x16xf32, #tpu.memory_space<any>>) target_semaphore(%arg4 : memref<!tpu.dma_semaphore, #tpu.memory_space<semaphore_mem>>)
    tpu.wait_dma2 semaphore(%arg4 : memref<!tpu.dma_semaphore, #tpu.memory_space<semaphore_mem>>) src(%arg3 : memref<3x4x16x16xf32, #tpu.memory_space<vmem>>) dst(%arg1 : memref<3x4x16x16xf32, #tpu.memory_space<any>>)
    return
  }
}

</mosaic_0001>

<bundles_post_ra>
// kernel: tpu_custom_call.1
= control target key start
LH: loop header
LB: loop body
LE: loop exit
PB: predicated region body
PF: predicated region fallthrough
CT: control target
= control target key end

     0   :  { %s144_s6 = smov [#allocation2]   ;;  %s186_s0 = inlined_call_operand.hbm [shape: f32[4,4,16,16], index: 0, kind: input, shape index: {}]   ;;  %s187_s1 = inlined_call_operand.hbm [shape: f32[3,4,16,16], index: 1, kind: output, shape index: {}]  }
   0x1   :  { %s13_s7 = sshll.u32 %s144_s6, 4  ;;  %s14_s7 = int_to_ptr.vmem [resolvable:$true] %s13_s7 }
   0x2   :  { %s108_s8 = scalar_lea.vmem %s14_s7, 4096  ;;  %p113_p1 = scmp.lt.s32.totalorder %s14_s7, %s14_s7 }
   0x3   :  { %p109_p0 = scmp.ne.s32.totalorder %s14_s7, %s108_s8  ;;  %p114_p2 = scmp.lt.s32.totalorder %s108_s8, %s108_s8 }
   0x5   :  { %p115_p3 = por %p114_p2, %p113_p1 }
   0x7   :  { %p116_p4 = pnand %p115_p3, %p109_p0 }
   0x9   :  { %119 = shalt.err (!%p116_p4)  }
   0xa   :  { %16 = dma.hbm_to_vmem [thread:$0]  %s186_s0, 4096, %s14_s7, [#allocation4] }
   0xb   :  { %140 = dma.done.wait [#allocation4], 4096 }
   0xc   :  { %141 = vsyncadd [#allocation4], 4294963200  ;;  %vm31_vm0 = vcmask 130048   ;;  %v23_v0 = vld [vmem:[#allocation2 + $0xc0] sm:$0xff]  ;;  %v24_v1 = vld [vmem:[#allocation2 + $0xc8] sm:$0xff]  ;;  %s145_s0 = smov [#allocation3]  }
   0xd   :  { %v25_v2 = vld [vmem:[#allocation2 + $0xd0] sm:$0xff]  ;;  %32 = vst.msk [vmem:[#allocation3] sm:$0xff] %vm31_vm0, %v23_v0  ;;  %33 = vst.msk [vmem:[#allocation3 + $0x8] sm:$0xff] %vm31_vm0, %v24_v1  ;;  %v26_v3 = vld [vmem:[#allocation2 + $0xd8] sm:$0xff]  ;;  %s82_s11 = sshll.u32 %s145_s0, 4  ;;  %s83_s11 = int_to_ptr.vmem [resolvable:$true] %s82_s11 }
   0xe   :  { %34 = vst.msk [vmem:[#allocation3 + $0x10] sm:$0xff] %vm31_vm0, %v25_v2  ;;  %v27_v4 = vld [vmem:[#allocation2 + $0xe0] sm:$0xff]  ;;  %v28_v5 = vld [vmem:[#allocation2 + $0xe8] sm:$0xff]  ;;  %35 = vst.msk [vmem:[#allocation3 + $0x18] sm:$0xff] %vm31_vm0, %v26_v3  ;;  %s120_s12 = scalar_lea.vmem %s83_s11, 3072  ;;  %p125_p6 = scmp.lt.s32.totalorder %s83_s11, %s83_s11 }
   0xf   :  { %36 = vst.msk [vmem:[#allocation3 + $0x20] sm:$0xff] %vm31_vm0, %v27_v4  ;;  %37 = vst.msk [vmem:[#allocation3 + $0x28] sm:$0xff] %vm31_vm0, %v28_v5  ;;  %v29_v6 = vld [vmem:[#allocation2 + $0xf0] sm:$0xff]  ;;  %v30_v7 = vld [vmem:[#allocation2 + $0xf8] sm:$0xff]  ;;  %p121_p5 = scmp.ne.s32.totalorder %s83_s11, %s120_s12  ;;  %p126_p7 = scmp.lt.s32.totalorder %s120_s12, %s120_s12 }
  0x10   :  { %v40_v8 = vld [vmem:[#allocation2] sm:$0xff]  ;;  %38 = vst.msk [vmem:[#allocation3 + $0x30] sm:$0xff] %vm31_vm0, %v29_v6  ;;  %39 = vst.msk [vmem:[#allocation3 + $0x38] sm:$0xff] %vm31_vm0, %v30_v7  ;;  %v41_v9 = vld [vmem:[#allocation2 + $0x8] sm:$0xff] }
  0x11   :  { %49 = vst.msk [vmem:[#allocation3 + $0x40] sm:$0xff] %vm31_vm0, %v40_v8  ;;  %v42_v10 = vld [vmem:[#allocation2 + $0x10] sm:$0xff]  ;;  %v43_v11 = vld [vmem:[#allocation2 + $0x18] sm:$0xff]  ;;  %50 = vst.msk [vmem:[#allocation3 + $0x48] sm:$0xff] %vm31_vm0, %v41_v9  ;;  %p127_p8 = por %p126_p7, %p125_p6 }
  0x12   :  { %51 = vst.msk [vmem:[#allocation3 + $0x50] sm:$0xff] %vm31_vm0, %v42_v10  ;;  %52 = vst.msk [vmem:[#allocation3 + $0x58] sm:$0xff] %vm31_vm0, %v43_v11  ;;  %v44_v12 = vld [vmem:[#allocation2 + $0x20] sm:$0xff]  ;;  %v45_v13 = vld [vmem:[#allocation2 + $0x28] sm:$0xff] }
  0x13   :  { %v46_v14 = vld [vmem:[#allocation2 + $0x30] sm:$0xff]  ;;  %53 = vst.msk [vmem:[#allocation3 + $0x60] sm:$0xff] %vm31_vm0, %v44_v12  ;;  %54 = vst.msk [vmem:[#allocation3 + $0x68] sm:$0xff] %vm31_vm0, %v45_v13  ;;  %v47_v15 = vld [vmem:[#allocation2 + $0x38] sm:$0xff]  ;;  %p128_p9 = pnand %p127_p8, %p121_p5 }
  0x14   :  { %55 = vst.msk [vmem:[#allocation3 + $0x70] sm:$0xff] %vm31_vm0, %v46_v14  ;;  %v58_v16 = vld [vmem:[#allocation2 + $0x40] sm:$0xff]  ;;  %v59_v17 = vld [vmem:[#allocation2 + $0x48] sm:$0xff]  ;;  %56 = vst.msk [vmem:[#allocation3 + $0x78] sm:$0xff] %vm31_vm0, %v47_v15 }
  0x15   :  { %67 = vst.msk [vmem:[#allocation3 + $0x80] sm:$0xff] %vm31_vm0, %v58_v16  ;;  %68 = vst.msk [vmem:[#allocation3 + $0x88] sm:$0xff] %vm31_vm0, %v59_v17  ;;  %v60_v18 = vld [vmem:[#allocation2 + $0x50] sm:$0xff]  ;;  %v61_v19 = vld [vmem:[#allocation2 + $0x58] sm:$0xff] }
  0x16   :  { %v62_v20 = vld [vmem:[#allocation2 + $0x60] sm:$0xff]  ;;  %69 = vst.msk [vmem:[#allocation3 + $0x90] sm:$0xff] %vm31_vm0, %v60_v18  ;;  %70 = vst.msk [vmem:[#allocation3 + $0x98] sm:$0xff] %vm31_vm0, %v61_v19  ;;  %v63_v21 = vld [vmem:[#allocation2 + $0x68] sm:$0xff] }
  0x17   :  { %71 = vst.msk [vmem:[#allocation3 + $0xa0] sm:$0xff] %vm31_vm0, %v62_v20  ;;  %v64_v22 = vld [vmem:[#allocation2 + $0x70] sm:$0xff]  ;;  %v65_v23 = vld [vmem:[#allocation2 + $0x78] sm:$0xff]  ;;  %72 = vst.msk [vmem:[#allocation3 + $0xa8] sm:$0xff] %vm31_vm0, %v63_v21 }
  0x18   :  { %73 = vst.msk [vmem:[#allocation3 + $0xb0] sm:$0xff] %vm31_vm0, %v64_v22  ;;  %74 = vst.msk [vmem:[#allocation3 + $0xb8] sm:$0xff] %vm31_vm0, %v65_v23 }
  0x19   :  { %131 = shalt.err (!%p128_p9)  }
  0x1a   :  { %85 = dma.vmem_to_hbm [thread:$0]  %s83_s11, 3072, %s187_s1, [#allocation4] }
  0x1b   :  { %142 = dma.done.wait [#allocation4], 3072 }
  0x1c   :  { %143 = vsyncadd [#allocation4], 4294964224 }
  0x1d   :  { %91 = vsyncmov [#allocation4] }
  0x20   :  { %s92_s15 = vpop.sfrf %91 }
  0x21   :  { %p97_p10 = scmp.ne.s32.totalorder %s92_s15, 0 }
  0x23   :  { %96 = shalt.err (%p97_p10)  }

</bundles_post_ra>
